<compile_context>
chip_gen: v7x
topology: tpu7x:2x2x1
jax: 0.10.0
libtpu: 0.0.40
codegen_flags: <defaults>
</compile_context>

<pallas_src>
import functools

import jax
import jax.numpy as jnp
from jax import lax
from jax.experimental import pallas as pl
from jax.experimental.pallas import tpu as pltpu


def _pick_head_group(n_head, head_dim, target_cols=256):
    """Largest divisor G of n_head with G*head_dim <= target_cols (MXU width)."""
    best = 1
    for g in range(1, n_head + 1):
        if n_head % g == 0 and g * head_dim <= target_cols:
            best = g
    return best


def _pick_vmem_limit():
    """Leave headroom below physical VMEM (64 MiB on v7x, 128 MiB on v5e/v6e)."""
    try:
        cap = pltpu.get_tpu_info().vmem_capacity_bytes
    except Exception:
        cap = 64 * 1024 * 1024
    return min(int(cap * 3 // 4), 100 * 1024 * 1024)


def _mha_kernel(x_ref, wqkv_ref, bqkv_ref, wo_ref, bo_ref, out_ref, qk_ref,
                acc_ref, *, n_group_heads, head_dim, causal, compute_dtype):
    # x_ref    : (1, T, D)          tokens for this batch element
    # wqkv_ref : (1, D, 3*G*hd)     fused per-group [Q|K|V] weights (bf16, pre-scaled)
    # bqkv_ref : (1, 1, 3*G*hd)     fused per-group biases (f32; zeros for K)
    # wo_ref   : (1, G*hd, D)       per-group row-slice of the output projection (bf16)
    # bo_ref   : (1, D)             output projection bias (f32)
    # out_ref  : (1, T, D)          output block (revisited across head groups)
    # qk_ref   : (1, G, T, T)       pre-softmax scores for this (batch, group)
    # acc_ref  : (T, D) f32         VMEM accumulator for the output projection
    G, hd = n_group_heads, head_dim
    hg = pl.program_id(1)

    @pl.when(hg == 0)
    def _init():
        acc_ref[...] = jnp.zeros_like(acc_ref)

    xb = x_ref[0].astype(compute_dtype)                          # (T, D) bf16
    T = xb.shape[0]

    # Fused QKV projection: one lane-dense bf16 MXU matmul, f32 accumulation,
    # f32 bias add.  Scale (hd**-0.25) is already folded into W/b for Q and K.
    qkv = jnp.dot(xb, wqkv_ref[0], preferred_element_type=jnp.float32)
    qkv = qkv + bqkv_ref[0]                                      # (T, 3*G*hd) f32

    if causal:
        row = lax.broadcasted_iota(jnp.int32, (T, T), 0)
        col = lax.broadcasted_iota(jnp.int32, (T, T), 1)
        neg = jnp.where(col > row, jnp.float32(-1e9), jnp.float32(0.0))

    ctx_parts = []
    for g in range(G):                                           # unrolled, G small
        q = qkv[:, g * hd:(g + 1) * hd].astype(compute_dtype)
        k = qkv[:, (G + g) * hd:(G + g + 1) * hd].astype(compute_dtype)
        v = qkv[:, (2 * G + g) * hd:(2 * G + g + 1) * hd].astype(compute_dtype)

        # Scores: contract the head dim directly (no explicit transpose).
        s = lax.dot_general(q, k, (((1,), (1,)), ((), ())),
                            preferred_element_type=jnp.float32)  # (T, T) f32
        if causal:
            s = s + neg
        qk_ref[0, g] = s.astype(qk_ref.dtype)                    # lane-dense store

        # Online-stable softmax; normalization deferred to after the PV matmul
        # so the (T,T) multiply becomes a (T,hd) one and no (T,T) `w` temp.
        m = jnp.max(s, axis=-1, keepdims=True)
        e = jnp.exp(s - m)                                       # f32 (T, T)
        inv = pl.reciprocal(jnp.sum(e, axis=-1, keepdims=True), approx=True)
        ctx_un = jnp.dot(e.astype(compute_dtype), v,
                         preferred_element_type=jnp.float32)     # (T, hd) f32
        ctx_parts.append(ctx_un * inv)

    # Output projection accumulated per group:
    #   out = concat_h(ctx_h) @ Wo^T = sum_hg ctx_grp @ Wo^T[grp_rows, :]
    ctx = jnp.concatenate(ctx_parts, axis=-1).astype(compute_dtype)  # (T, G*hd)
    acc_ref[...] += jnp.dot(ctx, wo_ref[0], preferred_element_type=jnp.float32)

    @pl.when(hg == pl.num_programs(1) - 1)
    def _finalize():
        out_ref[0] = (acc_ref[...] + bo_ref[...]).astype(out_ref.dtype)


def multi_head_attention(x, params, n_head, *, causal=True,
                         compute_dtype=jnp.bfloat16, qk_dtype=jnp.float32,
                         head_group=None):
    """x: (B, T, D). params use the PyTorch nn.Linear convention (weight (out, in)).
    Returns (out (B, T, D) in x.dtype, qk (B, H, T, T) in qk_dtype)."""
    B, T, D = x.shape
    H = n_head
    hd = D // H
    G = head_group if head_group is not None else _pick_head_group(H, hd)
    assert H % G == 0
    HG = H // G
    scale = float(hd) ** (-0.25)

    # ---- one-time weight prep (XLA glue) ----
    # Pre-transpose to (D_in, D_out), fold the qk scale into Q/K, fuse Q|K|V and
    # split per head-group so BlockSpecs stream one group's slice per step.
    wq_t = params['wq'].T * scale                                # (D, D)
    wk_t = params['wk'].T * scale
    wv_t = params['wv'].T

    def grp(w):                                                  # (D, D) -> (HG, D, G*hd)
        return w.reshape(D, HG, G * hd).transpose(1, 0, 2)

    w_qkv = jnp.concatenate([grp(wq_t), grp(wk_t), grp(wv_t)],
                            axis=-1).astype(compute_dtype)       # (HG, D, 3*G*hd)
    bq = (params['bq'] * scale).reshape(HG, 1, G * hd)
    bk = jnp.zeros_like(bq)                                      # key has no bias
    bv = params['bv'].reshape(HG, 1, G * hd)
    b_qkv = jnp.concatenate([bq, bk, bv], axis=-1).astype(jnp.float32)  # (HG, 1, 3*G*hd)

    wo = params['wo'].T.reshape(HG, G * hd, D).astype(compute_dtype)    # (HG, G*hd, D)
    bo = params['bo'].reshape(1, D).astype(jnp.float32)

    kernel = functools.partial(_mha_kernel, n_group_heads=G, head_dim=hd,
                               causal=causal, compute_dtype=compute_dtype)

    out, qk = pl.pallas_call(
        kernel,
        out_shape=(
            jax.ShapeDtypeStruct((B, T, D), x.dtype),
            jax.ShapeDtypeStruct((B, H, T, T), qk_dtype),
        ),
        grid_spec=pltpu.PrefetchScalarGridSpec(
            num_scalar_prefetch=0,
            grid=(B, HG),
            in_specs=[
                pl.BlockSpec((1, T, D), lambda b, hg: (b, 0, 0)),          # x (once per b)
                pl.BlockSpec((1, D, 3 * G * hd), lambda b, hg: (hg, 0, 0)),  # fused QKV w
                pl.BlockSpec((1, 1, 3 * G * hd), lambda b, hg: (hg, 0, 0)),  # fused QKV b
                pl.BlockSpec((1, G * hd, D), lambda b, hg: (hg, 0, 0)),      # wo group slice
                pl.BlockSpec((1, D), lambda b, hg: (0, 0)),                  # bo
            ],
            out_specs=[
                pl.BlockSpec((1, T, D), lambda b, hg: (b, 0, 0)),            # out (acc over hg)
                pl.BlockSpec((1, G, T, T), lambda b, hg: (b, hg, 0, 0)),     # qk per (b, group)
            ],
            scratch_shapes=[pltpu.VMEM((T, D), jnp.float32)],
        ),
        compiler_params=pltpu.CompilerParams(
            dimension_semantics=("parallel", "arbitrary"),
            vmem_limit_bytes=_pick_vmem_limit(),
        ),
    )(x, w_qkv, b_qkv, wo, bo)
    return out, qk


def reference_mha(x, params, mask, n_head):
    """Pure-JAX f32 reference mirroring the PyTorch forward."""
    B, T, D = x.shape
    H = n_head
    hd = D // H
    scale = float(hd) ** (-0.25)
    q = x @ params['wq'].T + params['bq']
    k = x @ params['wk'].T
    v = x @ params['wv'].T + params['bv']
    q = q.reshape(B, T, H, hd).transpose(0, 2, 1, 3) * scale
    k = k.reshape(B, T, H, hd).transpose(0, 2, 3, 1) * scale
    v = v.reshape(B, T, H, hd).transpose(0, 2, 1, 3)
    qk = (q @ k) + mask[None, None, :T, :T]
    qk = qk.astype(jnp.float32)
    w = jax.nn.softmax(qk, axis=-1).astype(x.dtype)
    wv = (w @ v).transpose(0, 2, 1, 3).reshape(B, T, D)
    out = wv @ params['wo'].T + params['bo']
    return out, qk


if __name__ == "__main__":
    B, T, D, H = 2, 8, 32, 4

    key = jax.random.PRNGKey(0)
    ks = jax.random.split(key, 8)
    # PyTorch nn.Linear weight convention: (out_features, in_features)
    params = {
        'wq': jax.random.normal(ks[0], (D, D), jnp.float32) * 0.05,
        'bq': jax.random.normal(ks[1], (D,), jnp.float32) * 0.05,
        'wk': jax.random.normal(ks[2], (D, D), jnp.float32) * 0.05,
        'wv': jax.random.normal(ks[3], (D, D), jnp.float32) * 0.05,
        'bv': jax.random.normal(ks[4], (D,), jnp.float32) * 0.05,
        'wo': jax.random.normal(ks[5], (D, D), jnp.float32) * 0.05,
        'bo': jax.random.normal(ks[6], (D,), jnp.float32) * 0.05,
    }
    x = jax.random.normal(ks[7], (B, T, D), jnp.float32)

    out, qk = multi_head_attention(x, params, H, causal=True)
    out = jax.block_until_ready(out)
    qk = jax.block_until_ready(qk)

    # Causal mask as used by the Whisper decoder self-attention (matches the
    # in-kernel iota mask exactly).
    mask = jnp.triu(jnp.full((T, T), -1e9, jnp.float32), k=1)
    out_ref, qk_ref = reference_mha(x, params, mask, H)

    # bf16 MXU compute vs f32 reference -> loosened tolerance (per review).
    assert jnp.allclose(out, out_ref, atol=2e-2, rtol=2e-2), "out mismatch"
    assert jnp.allclose(qk, qk_ref, atol=2e-2, rtol=2e-2), "qk mismatch"

    print("KERNEL_OK")
</pallas_src>

<mosaic_0001>
module attributes {stable_mosaic.version = 11 : i64} {
  func.func @_mha_kernel(%arg0: i32, %arg1: i32, %arg2: memref<1x8x32xf32, #tpu.memory_space<vmem>>, %arg3: memref<1x32x96xbf16, #tpu.memory_space<vmem>>, %arg4: memref<1x1x96xf32, #tpu.memory_space<vmem>>, %arg5: memref<1x32x32xbf16, #tpu.memory_space<vmem>>, %arg6: memref<1x32xf32, #tpu.memory_space<vmem>>, %arg7: memref<1x8x32xf32, #tpu.memory_space<vmem>>, %arg8: memref<1x4x8x8xf32, #tpu.memory_space<vmem>>, %arg9: memref<8x32xf32, #tpu.memory_space<vmem>>) attributes {dimension_semantics = [#tpu.dimension_semantics<parallel>, #tpu.dimension_semantics<arbitrary>], iteration_bounds = array<i64: 2, 1>, scalar_prefetch = 0 : i64, scratch_operands = 1 : i64, tpu.core_type = #tpu.core_type<tc>, window_params = [{transform_indices = @transform_0, window_bounds = array<i64: 1, 8, 32>}, {transform_indices = @transform_1, window_bounds = array<i64: 1, 32, 96>}, {transform_indices = @transform_2, window_bounds = array<i64: 1, 1, 96>}, {transform_indices = @transform_3, window_bounds = array<i64: 1, 32, 32>}, {pipeline_mode = #tpu.pipeline_mode<synchronous>, transform_indices = @transform_4, window_bounds = array<i64: 1, 32>}, {transform_indices = @transform_5, window_bounds = array<i64: 1, 8, 32>}, {transform_indices = @transform_6, window_bounds = array<i64: 1, 4, 8, 8>}]} {
    %c0_i32 = arith.constant 0 : i32
    %0 = arith.cmpi eq, %arg1, %c0_i32 : i32
    %1 = arith.extui %0 : i1 to i32
    %c0_i32_0 = arith.constant 0 : i32
    %2 = arith.cmpi ne, %1, %c0_i32_0 : i32
    scf.if %2 {
      %cst_50 = arith.constant 0.000000e+00 : f32
      %122 = vector.broadcast %cst_50 : f32 to vector<8x32xf32>
      %c0_51 = arith.constant 0 : index
      %c0_52 = arith.constant 0 : index
      %123 = vector.load %arg9[%c0_51, %c0_52] : memref<8x32xf32, #tpu.memory_space<vmem>>, vector<8x32xf32>
      tpu.vector_store %arg9[%c0_51, %c0_52], %122 {strides = array<i32>} : memref<8x32xf32, #tpu.memory_space<vmem>>, vector<8x32xf32>,
    } else {
    }
    %c0 = arith.constant 0 : index
    %c0_1 = arith.constant 0 : index
    %c0_2 = arith.constant 0 : index
    %3 = vector.load %arg2[%c0, %c0_1, %c0_2] : memref<1x8x32xf32, #tpu.memory_space<vmem>>, vector<1x8x32xf32>
    %4 = vector.shape_cast %3 : vector<1x8x32xf32> to vector<8x32xf32>
    %5 = arith.truncf %4 : vector<8x32xf32> to vector<8x32xbf16>
    %c0_3 = arith.constant 0 : index
    %c0_4 = arith.constant 0 : index
    %c0_5 = arith.constant 0 : index
    %6 = vector.load %arg3[%c0_3, %c0_4, %c0_5] : memref<1x32x96xbf16, #tpu.memory_space<vmem>>, vector<1x32x96xbf16>
    %7 = vector.shape_cast %6 : vector<1x32x96xbf16> to vector<32x96xbf16>
    %cst = arith.constant dense<0.000000e+00> : vector<8x96xf32>
    %8 = tpu.matmul %5, %7, %cst {dimension_numbers = #tpu.dot_dimension_numbers<[1], [0], [0], [1], [0, 0, 1, 1], [], []>} : vector<8x32xbf16>, vector<32x96xbf16>, vector<8x96xf32> -> vector<8x96xf32>
    %c0_6 = arith.constant 0 : index
    %c0_7 = arith.constant 0 : index
    %c0_8 = arith.constant 0 : index
    %9 = vector.load %arg4[%c0_6, %c0_7, %c0_8] : memref<1x1x96xf32, #tpu.memory_space<vmem>>, vector<1x1x96xf32>
    %10 = vector.shape_cast %9 : vector<1x1x96xf32> to vector<1x96xf32>
    %11 = vector.broadcast %10 : vector<1x96xf32> to vector<8x96xf32>
    %12 = arith.addf %8, %11 : vector<8x96xf32>
    %13 = tpu.iota {dimensions = array<i32: 0>} : vector<8x8xi32>
    %14 = tpu.iota {dimensions = array<i32: 1>} : vector<8x8xi32>
    %15 = arith.cmpi sgt, %14, %13 : vector<8x8xi32>
    %cst_9 = arith.constant -1.000000e+09 : f32
    %cst_10 = arith.constant 0.000000e+00 : f32
    %16 = vector.broadcast %cst_9 : f32 to vector<8x8xf32>
    %17 = vector.broadcast %cst_10 : f32 to vector<8x8xf32>
    %18 = arith.select %15, %16, %17 : vector<8x8xi1>, vector<8x8xf32>
    %19 = vector.extract_strided_slice %12 {offsets = [0, 0], sizes = [8, 8], strides = [1, 1]} : vector<8x96xf32> to vector<8x8xf32>
    %20 = arith.truncf %19 : vector<8x8xf32> to vector<8x8xbf16>
    %21 = vector.extract_strided_slice %12 {offsets = [0, 32], sizes = [8, 8], strides = [1, 1]} : vector<8x96xf32> to vector<8x8xf32>
    %22 = arith.truncf %21 : vector<8x8xf32> to vector<8x8xbf16>
    %23 = vector.extract_strided_slice %12 {offsets = [0, 64], sizes = [8, 8], strides = [1, 1]} : vector<8x96xf32> to vector<8x8xf32>
    %24 = arith.truncf %23 : vector<8x8xf32> to vector<8x8xbf16>
    %cst_11 = arith.constant dense<0.000000e+00> : vector<8x8xf32>
    %25 = tpu.matmul %20, %22, %cst_11 {dimension_numbers = #tpu.dot_dimension_numbers<[1], [1], [0], [0], [0, 0, 1, 0], [], []>} : vector<8x8xbf16>, vector<8x8xbf16>, vector<8x8xf32> -> vector<8x8xf32>
    %26 = arith.addf %25, %18 : vector<8x8xf32>
    %c0_12 = arith.constant 0 : index
    %c0_13 = arith.constant 0 : index
    %c0_14 = arith.constant 0 : index
    %c0_15 = arith.constant 0 : index
    %27 = vector.load %arg8[%c0_12, %c0_13, %c0_14, %c0_15] : memref<1x4x8x8xf32, #tpu.memory_space<vmem>>, vector<1x1x8x8xf32>
    %28 = vector.shape_cast %27 : vector<1x1x8x8xf32> to vector<8x8xf32>
    %29 = vector.shape_cast %26 : vector<8x8xf32> to vector<1x1x8x8xf32>
    tpu.vector_store %arg8[%c0_12, %c0_13, %c0_14, %c0_15], %29 {strides = array<i32>} : memref<1x4x8x8xf32, #tpu.memory_space<vmem>>, vector<1x1x8x8xf32>,
    %cst_16 = arith.constant dense<0xFF800000> : vector<8xf32>
    %30 = vector.multi_reduction <maximumf>, %26, %cst_16 [1] : vector<8x8xf32> to vector<8xf32>
    %31 = vector.shape_cast %30 : vector<8xf32> to vector<8x1xf32>
    %32 = vector.broadcast %31 : vector<8x1xf32> to vector<8x8xf32>
    %33 = arith.subf %26, %32 : vector<8x8xf32>
    %34 = math.exp %33 : vector<8x8xf32>
    %cst_17 = arith.constant dense<0.000000e+00> : vector<8xf32>
    %35 = vector.multi_reduction <add>, %34, %cst_17 [1] : vector<8x8xf32> to vector<8xf32>
    %36 = vector.shape_cast %35 : vector<8xf32> to vector<8x1xf32>
    %37 = tpu.reciprocal %36 {approx = true} : vector<8x1xf32> -> vector<8x1xf32>
    %38 = arith.truncf %34 : vector<8x8xf32> to vector<8x8xbf16>
    %cst_18 = arith.constant dense<0.000000e+00> : vector<8x8xf32>
    %39 = tpu.matmul %38, %24, %cst_18 {dimension_numbers = #tpu.dot_dimension_numbers<[1], [0], [0], [1], [0, 0, 1, 1], [], []>} : vector<8x8xbf16>, vector<8x8xbf16>, vector<8x8xf32> -> vector<8x8xf32>
    %40 = vector.broadcast %37 : vector<8x1xf32> to vector<8x8xf32>
    %41 = arith.mulf %39, %40 : vector<8x8xf32>
    %42 = vector.extract_strided_slice %12 {offsets = [0, 8], sizes = [8, 8], strides = [1, 1]} : vector<8x96xf32> to vector<8x8xf32>
    %43 = arith.truncf %42 : vector<8x8xf32> to vector<8x8xbf16>
    %44 = vector.extract_strided_slice %12 {offsets = [0, 40], sizes = [8, 8], strides = [1, 1]} : vector<8x96xf32> to vector<8x8xf32>
    %45 = arith.truncf %44 : vector<8x8xf32> to vector<8x8xbf16>
    %46 = vector.extract_strided_slice %12 {offsets = [0, 72], sizes = [8, 8], strides = [1, 1]} : vector<8x96xf32> to vector<8x8xf32>
    %47 = arith.truncf %46 : vector<8x8xf32> to vector<8x8xbf16>
    %cst_19 = arith.constant dense<0.000000e+00> : vector<8x8xf32>
    %48 = tpu.matmul %43, %45, %cst_19 {dimension_numbers = #tpu.dot_dimension_numbers<[1], [1], [0], [0], [0, 0, 1, 0], [], []>} : vector<8x8xbf16>, vector<8x8xbf16>, vector<8x8xf32> -> vector<8x8xf32>
    %49 = arith.addf %48, %18 : vector<8x8xf32>
    %c0_20 = arith.constant 0 : index
    %c1 = arith.constant 1 : index
    %c0_21 = arith.constant 0 : index
    %c0_22 = arith.constant 0 : index
    %50 = vector.load %arg8[%c0_20, %c1, %c0_21, %c0_22] : memref<1x4x8x8xf32, #tpu.memory_space<vmem>>, vector<1x1x8x8xf32>
    %51 = vector.shape_cast %50 : vector<1x1x8x8xf32> to vector<8x8xf32>
    %52 = vector.shape_cast %49 : vector<8x8xf32> to vector<1x1x8x8xf32>
    tpu.vector_store %arg8[%c0_20, %c1, %c0_21, %c0_22], %52 {strides = array<i32>} : memref<1x4x8x8xf32, #tpu.memory_space<vmem>>, vector<1x1x8x8xf32>,
    %cst_23 = arith.constant dense<0xFF800000> : vector<8xf32>
    %53 = vector.multi_reduction <maximumf>, %49, %cst_23 [1] : vector<8x8xf32> to vector<8xf32>
    %54 = vector.shape_cast %53 : vector<8xf32> to vector<8x1xf32>
    %55 = vector.broadcast %54 : vector<8x1xf32> to vector<8x8xf32>
    %56 = arith.subf %49, %55 : vector<8x8xf32>
    %57 = math.exp %56 : vector<8x8xf32>
    %cst_24 = arith.constant dense<0.000000e+00> : vector<8xf32>
    %58 = vector.multi_reduction <add>, %57, %cst_24 [1] : vector<8x8xf32> to vector<8xf32>
    %59 = vector.shape_cast %58 : vector<8xf32> to vector<8x1xf32>
    %60 = tpu.reciprocal %59 {approx = true} : vector<8x1xf32> -> vector<8x1xf32>
    %61 = arith.truncf %57 : vector<8x8xf32> to vector<8x8xbf16>
    %cst_25 = arith.constant dense<0.000000e+00> : vector<8x8xf32>
    %62 = tpu.matmul %61, %47, %cst_25 {dimension_numbers = #tpu.dot_dimension_numbers<[1], [0], [0], [1], [0, 0, 1, 1], [], []>} : vector<8x8xbf16>, vector<8x8xbf16>, vector<8x8xf32> -> vector<8x8xf32>
    %63 = vector.broadcast %60 : vector<8x1xf32> to vector<8x8xf32>
    %64 = arith.mulf %62, %63 : vector<8x8xf32>
    %65 = vector.extract_strided_slice %12 {offsets = [0, 16], sizes = [8, 8], strides = [1, 1]} : vector<8x96xf32> to vector<8x8xf32>
    %66 = arith.truncf %65 : vector<8x8xf32> to vector<8x8xbf16>
    %67 = vector.extract_strided_slice %12 {offsets = [0, 48], sizes = [8, 8], strides = [1, 1]} : vector<8x96xf32> to vector<8x8xf32>
    %68 = arith.truncf %67 : vector<8x8xf32> to vector<8x8xbf16>
    %69 = vector.extract_strided_slice %12 {offsets = [0, 80], sizes = [8, 8], strides = [1, 1]} : vector<8x96xf32> to vector<8x8xf32>
    %70 = arith.truncf %69 : vector<8x8xf32> to vector<8x8xbf16>
    %cst_26 = arith.constant dense<0.000000e+00> : vector<8x8xf32>
    %71 = tpu.matmul %66, %68, %cst_26 {dimension_numbers = #tpu.dot_dimension_numbers<[1], [1], [0], [0], [0, 0, 1, 0], [], []>} : vector<8x8xbf16>, vector<8x8xbf16>, vector<8x8xf32> -> vector<8x8xf32>
    %72 = arith.addf %71, %18 : vector<8x8xf32>
    %c0_27 = arith.constant 0 : index
    %c2 = arith.constant 2 : index
    %c0_28 = arith.constant 0 : index
    %c0_29 = arith.constant 0 : index
    %73 = vector.load %arg8[%c0_27, %c2, %c0_28, %c0_29] : memref<1x4x8x8xf32, #tpu.memory_space<vmem>>, vector<1x1x8x8xf32>
    %74 = vector.shape_cast %73 : vector<1x1x8x8xf32> to vector<8x8xf32>
    %75 = vector.shape_cast %72 : vector<8x8xf32> to vector<1x1x8x8xf32>
    tpu.vector_store %arg8[%c0_27, %c2, %c0_28, %c0_29], %75 {strides = array<i32>} : memref<1x4x8x8xf32, #tpu.memory_space<vmem>>, vector<1x1x8x8xf32>,
    %cst_30 = arith.constant dense<0xFF800000> : vector<8xf32>
    %76 = vector.multi_reduction <maximumf>, %72, %cst_30 [1] : vector<8x8xf32> to vector<8xf32>
    %77 = vector.shape_cast %76 : vector<8xf32> to vector<8x1xf32>
    %78 = vector.broadcast %77 : vector<8x1xf32> to vector<8x8xf32>
    %79 = arith.subf %72, %78 : vector<8x8xf32>
    %80 = math.exp %79 : vector<8x8xf32>
    %cst_31 = arith.constant dense<0.000000e+00> : vector<8xf32>
    %81 = vector.multi_reduction <add>, %80, %cst_31 [1] : vector<8x8xf32> to vector<8xf32>
    %82 = vector.shape_cast %81 : vector<8xf32> to vector<8x1xf32>
    %83 = tpu.reciprocal %82 {approx = true} : vector<8x1xf32> -> vector<8x1xf32>
    %84 = arith.truncf %80 : vector<8x8xf32> to vector<8x8xbf16>
    %cst_32 = arith.constant dense<0.000000e+00> : vector<8x8xf32>
    %85 = tpu.matmul %84, %70, %cst_32 {dimension_numbers = #tpu.dot_dimension_numbers<[1], [0], [0], [1], [0, 0, 1, 1], [], []>} : vector<8x8xbf16>, vector<8x8xbf16>, vector<8x8xf32> -> vector<8x8xf32>
    %86 = vector.broadcast %83 : vector<8x1xf32> to vector<8x8xf32>
    %87 = arith.mulf %85, %86 : vector<8x8xf32>
    %88 = vector.extract_strided_slice %12 {offsets = [0, 24], sizes = [8, 8], strides = [1, 1]} : vector<8x96xf32> to vector<8x8xf32>
    %89 = arith.truncf %88 : vector<8x8xf32> to vector<8x8xbf16>
    %90 = vector.extract_strided_slice %12 {offsets = [0, 56], sizes = [8, 8], strides = [1, 1]} : vector<8x96xf32> to vector<8x8xf32>
    %91 = arith.truncf %90 : vector<8x8xf32> to vector<8x8xbf16>
    %92 = vector.extract_strided_slice %12 {offsets = [0, 88], sizes = [8, 8], strides = [1, 1]} : vector<8x96xf32> to vector<8x8xf32>
    %93 = arith.truncf %92 : vector<8x8xf32> to vector<8x8xbf16>
    %cst_33 = arith.constant dense<0.000000e+00> : vector<8x8xf32>
    %94 = tpu.matmul %89, %91, %cst_33 {dimension_numbers = #tpu.dot_dimension_numbers<[1], [1], [0], [0], [0, 0, 1, 0], [], []>} : vector<8x8xbf16>, vector<8x8xbf16>, vector<8x8xf32> -> vector<8x8xf32>
    %95 = arith.addf %94, %18 : vector<8x8xf32>
    %c0_34 = arith.constant 0 : index
    %c3 = arith.constant 3 : index
    %c0_35 = arith.constant 0 : index
    %c0_36 = arith.constant 0 : index
    %96 = vector.load %arg8[%c0_34, %c3, %c0_35, %c0_36] : memref<1x4x8x8xf32, #tpu.memory_space<vmem>>, vector<1x1x8x8xf32>
    %97 = vector.shape_cast %96 : vector<1x1x8x8xf32> to vector<8x8xf32>
    %98 = vector.shape_cast %95 : vector<8x8xf32> to vector<1x1x8x8xf32>
    tpu.vector_store %arg8[%c0_34, %c3, %c0_35, %c0_36], %98 {strides = array<i32>} : memref<1x4x8x8xf32, #tpu.memory_space<vmem>>, vector<1x1x8x8xf32>,
    %cst_37 = arith.constant dense<0xFF800000> : vector<8xf32>
    %99 = vector.multi_reduction <maximumf>, %95, %cst_37 [1] : vector<8x8xf32> to vector<8xf32>
    %100 = vector.shape_cast %99 : vector<8xf32> to vector<8x1xf32>
    %101 = vector.broadcast %100 : vector<8x1xf32> to vector<8x8xf32>
    %102 = arith.subf %95, %101 : vector<8x8xf32>
    %103 = math.exp %102 : vector<8x8xf32>
    %cst_38 = arith.constant dense<0.000000e+00> : vector<8xf32>
    %104 = vector.multi_reduction <add>, %103, %cst_38 [1] : vector<8x8xf32> to vector<8xf32>
    %105 = vector.shape_cast %104 : vector<8xf32> to vector<8x1xf32>
    %106 = tpu.reciprocal %105 {approx = true} : vector<8x1xf32> -> vector<8x1xf32>
    %107 = arith.truncf %103 : vector<8x8xf32> to vector<8x8xbf16>
    %cst_39 = arith.constant dense<0.000000e+00> : vector<8x8xf32>
    %108 = tpu.matmul %107, %93, %cst_39 {dimension_numbers = #tpu.dot_dimension_numbers<[1], [0], [0], [1], [0, 0, 1, 1], [], []>} : vector<8x8xbf16>, vector<8x8xbf16>, vector<8x8xf32> -> vector<8x8xf32>
    %109 = vector.broadcast %106 : vector<8x1xf32> to vector<8x8xf32>
    %110 = arith.mulf %108, %109 : vector<8x8xf32>
    %111 = tpu.concatenate %41, %64, %87, %110 in 1 : vector<8x8xf32>, vector<8x8xf32>, vector<8x8xf32>, vector<8x8xf32> -> vector<8x32xf32>
    %112 = arith.truncf %111 : vector<8x32xf32> to vector<8x32xbf16>
    %c0_40 = arith.constant 0 : index
    %c0_41 = arith.constant 0 : index
    %113 = vector.load %arg9[%c0_40, %c0_41] : memref<8x32xf32, #tpu.memory_space<vmem>>, vector<8x32xf32>
    %c0_42 = arith.constant 0 : index
    %c0_43 = arith.constant 0 : index
    %c0_44 = arith.constant 0 : index
    %114 = vector.load %arg5[%c0_42, %c0_43, %c0_44] : memref<1x32x32xbf16, #tpu.memory_space<vmem>>, vector<1x32x32xbf16>
    %115 = vector.shape_cast %114 : vector<1x32x32xbf16> to vector<32x32xbf16>
    %cst_45 = arith.constant dense<0.000000e+00> : vector<8x32xf32>
    %116 = tpu.matmul %112, %115, %cst_45 {dimension_numbers = #tpu.dot_dimension_numbers<[1], [0], [0], [1], [0, 0, 1, 1], [], []>} : vector<8x32xbf16>, vector<32x32xbf16>, vector<8x32xf32> -> vector<8x32xf32>
    %117 = arith.addf %113, %116 : vector<8x32xf32>
    %c0_46 = arith.constant 0 : index
    %c0_47 = arith.constant 0 : index
    %118 = vector.load %arg9[%c0_46, %c0_47] : memref<8x32xf32, #tpu.memory_space<vmem>>, vector<8x32xf32>
    tpu.vector_store %arg9[%c0_46, %c0_47], %117 {strides = array<i32>} : memref<8x32xf32, #tpu.memory_space<vmem>>, vector<8x32xf32>,
    %c0_i32_48 = arith.constant 0 : i32
    %119 = arith.cmpi eq, %arg1, %c0_i32_48 : i32
    %120 = arith.extui %119 : i1 to i32
    %c0_i32_49 = arith.constant 0 : i32
    %121 = arith.cmpi ne, %120, %c0_i32_49 : i32
    scf.if %121 {
      %c0_50 = arith.constant 0 : index
      %c0_51 = arith.constant 0 : index
      %122 = vector.load %arg9[%c0_50, %c0_51] : memref<8x32xf32, #tpu.memory_space<vmem>>, vector<8x32xf32>
      %c0_52 = arith.constant 0 : index
      %c0_53 = arith.constant 0 : index
      %123 = vector.load %arg6[%c0_52, %c0_53] : memref<1x32xf32, #tpu.memory_space<vmem>>, vector<1x32xf32>
      %124 = vector.broadcast %123 : vector<1x32xf32> to vector<8x32xf32>
      %125 = arith.addf %122, %124 : vector<8x32xf32>
      %c0_54 = arith.constant 0 : index
      %c0_55 = arith.constant 0 : index
      %c0_56 = arith.constant 0 : index
      %126 = vector.load %arg7[%c0_54, %c0_55, %c0_56] : memref<1x8x32xf32, #tpu.memory_space<vmem>>, vector<1x8x32xf32>
      %127 = vector.shape_cast %126 : vector<1x8x32xf32> to vector<8x32xf32>
      %128 = vector.shape_cast %125 : vector<8x32xf32> to vector<1x8x32xf32>
      tpu.vector_store %arg7[%c0_54, %c0_55, %c0_56], %128 {strides = array<i32>} : memref<1x8x32xf32, #tpu.memory_space<vmem>>, vector<1x8x32xf32>,
    } else {
    }
    return
  }
  func.func @transform_0(%arg0: i32, %arg1: i32) -> (i32, i32, i32) {
    %c0_i32 = arith.constant 0 : i32
    %c0_i32_0 = arith.constant 0 : i32
    %c0_i32_1 = arith.constant 0 : i32
    return %arg0, %c0_i32, %c0_i32_0 : i32, i32, i32
  }
  func.func @transform_1(%arg0: i32, %arg1: i32) -> (i32, i32, i32) {
    %c0_i32 = arith.constant 0 : i32
    %c0_i32_0 = arith.constant 0 : i32
    %c0_i32_1 = arith.constant 0 : i32
    return %arg1, %c0_i32, %c0_i32_0 : i32, i32, i32
  }
  func.func @transform_2(%arg0: i32, %arg1: i32) -> (i32, i32, i32) {
    %c0_i32 = arith.constant 0 : i32
    %c0_i32_0 = arith.constant 0 : i32
    %c0_i32_1 = arith.constant 0 : i32
    return %arg1, %c0_i32, %c0_i32_0 : i32, i32, i32
  }
  func.func @transform_3(%arg0: i32, %arg1: i32) -> (i32, i32, i32) {
    %c0_i32 = arith.constant 0 : i32
    %c0_i32_0 = arith.constant 0 : i32
    %c0_i32_1 = arith.constant 0 : i32
    return %arg1, %c0_i32, %c0_i32_0 : i32, i32, i32
  }
  func.func @transform_4(%arg0: i32, %arg1: i32) -> (i32, i32) {
    %c0_i32 = arith.constant 0 : i32
    %c0_i32_0 = arith.constant 0 : i32
    %c0_i32_1 = arith.constant 0 : i32
    return %c0_i32, %c0_i32_0 : i32, i32
  }
  func.func @transform_5(%arg0: i32, %arg1: i32) -> (i32, i32, i32) {
    %c0_i32 = arith.constant 0 : i32
    %c0_i32_0 = arith.constant 0 : i32
    %c0_i32_1 = arith.constant 0 : i32
    return %arg0, %c0_i32, %c0_i32_0 : i32, i32, i32
  }
  func.func @transform_6(%arg0: i32, %arg1: i32) -> (i32, i32, i32, i32) {
    %c0_i32 = arith.constant 0 : i32
    %c0_i32_0 = arith.constant 0 : i32
    %c0_i32_1 = arith.constant 0 : i32
    return %arg0, %arg1, %c0_i32, %c0_i32_0 : i32, i32, i32, i32
  }
}

</mosaic_0001>

<bundles_post_ra>
// kernel: tpu_custom_call.1
= control target key start
LH: loop header
LB: loop body
LE: loop exit
PB: predicated region body
PF: predicated region fallthrough
CT: control target
= control target key end

     0   :  { %12 = vsyncpa [#allocation4], 0  ;;  %s2065_s0 = inlined_call_operand.hbm [shape: f32[2,8,32], index: 0, kind: input, shape index: {}]   ;;  %s2066_s1 = inlined_call_operand.hbm [shape: bf16[1,32,96], index: 1, kind: input, shape index: {}]   ;;  %s2067_s2 = inlined_call_operand.vmem [shape: f32[1,1,96], index: 2, kind: input, shape index: {}]   ;;  %s2068_s3 = inlined_call_operand.hbm [shape: bf16[1,32,32], index: 3, kind: input, shape index: {}]   ;;  %s2069_s4 = inlined_call_operand.vmem [shape: f32[1,32], index: 4, kind: input, shape index: {}]   ;;  %s2070_s5 = inlined_call_operand.hbm [shape: f32[2,8,32], index: 5, kind: output, shape index: {0}]   ;;  %s2071_s6 = inlined_call_operand.hbm [shape: f32[2,4,8,8], index: 6, kind: output, shape index: {1}]  }
   0x1   :  { %14 = vsyncpa [#allocation4 + $0x1], 0 }
   0x2   :  { %15 = vsyncpa [#allocation7], 0 }
   0x3   :  { %16 = vsyncpa [#allocation5], 0 }
   0x4   :  { %18 = vsyncpa [#allocation5 + $0x1], 0 }
   0x5   :  { %19 = vsyncpa [#allocation11], 0 }
   0x6   :  { %21 = vsyncpa [#allocation11 + $0x1], 0  ;;  %s1681_s21 = smov 0   ;;  %s1683_s22 = smov 0  }
   0x7   :  { %s1685_s23 = smov 0   ;;  %s1687_s24 = smov 0  }
   0x8   :  { %s1689_s25 = smov 0   ;;  %s1691_s26 = smov 0  }
   0x9 LB: > { %s1161_s27 = sadd.s32 4294967295, %s1620_s26   ;;  %s1162_s28 = sadd.s32 4294967294, %s1620_s26   ;;  %s1620_s26 = sphi %s1691_s26, %s27_s26   ;;  %s1616_s25 = sphi %s1689_s25, %s2096_s25   ;;  %s1612_s24 = sphi %s1687_s24, %s2095_s24   ;;  %s1608_s23 = sphi %s1685_s23, %s2094_s23   ;;  %s1604_s22 = sphi %s1683_s22, %s2093_s22   ;;  %s1600_s21 = sphi %s1681_s21, %s2092_s21  }
   0xa   : > { %p59_p0 = scmp.ne.s32.totalorder %s1604_s22, %s1600_s21  ;;  %p1715_p1 = scmp.eq.s32.totalorder %s1161_s27, 0 }
   0xb   : > { %p1719_p2 = scmp.eq.s32.totalorder %s1161_s27, 1  ;;  %p188_p3 = scmp.eq.s32.totalorder %s1162_s28, 1 }
   0xc   : > { %s2077_s29 = scalar_select %p1715_p1, 1, 0 }
   0xd   : > { %p1725_p4 = por %p1715_p1, %p59_p0  ;;  %p1163_p5 = scmp.ge.s32.totalorder %s1620_s26, 1 }
   0xe   : > { %p1730_p6 = por %p188_p3, %p59_p0  ;;  %p223_p7 = scmp.lt.s32.totalorder %s1620_s26, 3 }
   0xf   : > { %s2079_s7 = scalar_select %p1725_p4, 1, 0 }
  0x10   : > { %s2080_s8 = scalar_select %p1730_p6, 1, 0 }
  0x11   : > { %p1735_p8 = pnand %p1163_p5, %p223_p7  ;;  %s1622_s10 = smov [#allocation6]  }
  0x12   : > { %2081 = sst [smem:[#allocation16_spill]] %s2080_s8  ;;  %s238_s11 = sshll.u32 %s1622_s10, 4  ;;  %s1739_s11 = int_to_ptr.vmem [resolvable:$true] %s238_s11 }
  0x13   : > { %p1303_p9 = pneg %p1735_p8  ;;  %s1623_s13 = smov [#allocation8]  }
  0x14   : > { %s260_s14 = sshll.u32 %s1623_s13, 4  ;;  %s1416_s17 = scalar_lea.hbm %s2066_s1, 256  ;;  %s1750_s14 = int_to_ptr.vmem [resolvable:$true] %s260_s14 }
  0x15   : > { %p1746_p11 = pnand %p1303_p9, %p1715_p1  ;;  %p1417_p12 = scmp.ne.s32.totalorder %s2066_s1, %s1416_s17 }
  0x16   : > { %p1423_p5 = scmp.lt.u32.totalorder %s1416_s17, %s2066_s1 }
  0x17   : > { %p1418_p13 = pneg %p1746_p11 }
  0x19   : > { %p1419_p0 = pnand %p1418_p13, %p1417_p12 }
  0x1b   : > { %p1420_p3 = pneg %p1419_p0 }
  0x1d   : > { %p1425_p7 = pnand %p1423_p5, %p1420_p3 }
  0x1f   : > { %1428 = shalt.err (!%p1425_p7)
}
  0x20   : > { %s1429_s28 = scalar_lea.vmem %s1739_s11, 256  ;;  %p1437_p1 = scmp.lt.s32.totalorder %s1739_s11, %s1739_s11 }
  0x21   : > { %p1430_p9 = scmp.ne.s32.totalorder %s1739_s11, %s1429_s28  ;;  %p1438_p12 = scmp.lt.s32.totalorder %s1429_s28, %s1429_s28 }
  0x23   : > { %p1432_p10 = pnand %p1430_p9, %p1418_p13  ;;  %p1439_p0 = por %p1438_p12, %p1437_p1 }
  0x25   : > { %p1433_p6 = pneg %p1432_p10 }
  0x27   : > { %p1440_p4 = pnand %p1439_p0, %p1433_p6 }
  0x29   : > { %1443 = shalt.err (!%p1440_p4)
}
  0x2a   : > { %s1624_s10 = smov 64   ;;  %s1625_s13 = smov 4  }
  0x2b   : > { %1306 = dma.hbm_to_vmem [thread:$0]  (!%p1746_p11), %s2066_s1, 256, %s1739_s11, [#allocation7], %s1624_s10, %s1624_s10, %s1625_s13  }
  0x2c   : > { %s1444_s19 = scalar_lea.hbm %s2068_s3, 256 }
  0x2d   : > { %p1445_p1 = scmp.ne.s32.totalorder %s2068_s3, %s1444_s19  ;;  %p1451_p10 = scmp.lt.u32.totalorder %s1444_s19, %s2068_s3 }
  0x2f   : > { %p1447_p4 = pnand %p1445_p1, %p1418_p13 }
  0x31   : > { %p1448_p6 = pneg %p1447_p4 }
  0x33   : > { %p1453_p3 = pnand %p1451_p10, %p1448_p6 }
  0x35   : > { %1456 = shalt.err (!%p1453_p3)
}
  0x36   : > { %s1457_s11 = scalar_lea.vmem %s1750_s14, 256  ;;  %p1465_p12 = scmp.lt.s32.totalorder %s1750_s14, %s1750_s14 }
  0x37   : > { %p1458_p5 = scmp.ne.s32.totalorder %s1750_s14, %s1457_s11  ;;  %p1466_p0 = scmp.lt.s32.totalorder %s1457_s11, %s1457_s11 }
  0x39   : > { %p1460_p7 = pnand %p1458_p5, %p1418_p13  ;;  %p1467_p1 = por %p1466_p0, %p1465_p12 }
  0x3b   : > { %p1461_p9 = pneg %p1460_p7 }
  0x3d   : > { %p1468_p4 = pnand %p1467_p1, %p1461_p9 }
  0x3f   : > { %1471 = shalt.err (!%p1468_p4)
}
  0x40   : > { %1309 = dma.hbm_to_vmem [thread:$0]  (!%p1746_p11), %s2068_s3, 256, %s1750_s14, [#allocation7], %s1624_s10, %s1624_s10, %s1625_s13  }
  0x41   : > { %s39_s16 = sadd.s32 1, %s1616_s25  ;;  %s46_s17 = sadd.s32 1, %s1608_s23 }
  0x42   : > { %p41_p13 = scmp.ge.s32.totalorder %s39_s16, 2  ;;  %p53_p6 = scmp.ne.s32.totalorder %s1608_s23, %s1604_s22 }
  0x43   : > { %p54_p10 = scmp.eq.s32.totalorder %s1620_s26, 0  ;;  %p1323_p3 = scmp.lt.s32.totalorder %s1620_s26, 2 }
  0x44   : > { %s2098_s16 = smov (%p41_p13, %s39_s16), 0  ;;  %p1814_p7 = por %p1719_p2, %p53_p6 }
  0x45   : > { %p55_p5 = por %p54_p10, %p53_p6  ;;  %s43_s18 = ssub.s32 %s1616_s25, %s2098_s16 }
  0x46   : > { %s2084_s12 = scalar_select %p1814_p7, 1, 0 }
  0x47   : > { %s277_s19 = sand.u32 1, %s1608_s23   ;;  %p44_p9 = scmp.eq.s32.totalorder %s43_s18, 0 }
  0x48   : > { %s1168_s14 = sshll.u32 %s277_s19, 3  ;;  %s1169_s10 = sshll.u32 %s1616_s25, 7 }
  0x49   : > { %s1823_s13 = scalar_select %p44_p9, %s1608_s23, %s46_s17  }
  0x4a   : > { %s1828_s28 = scalar_lea.hbm %s2065_s0, %s1169_s10  ;;  %s281_s30 = scalar_lea.vmem [#allocation3], %s1168_s14 }
  0x4b   : > { %s288_s11 = sshll.u32 %s281_s30, 4  ;;  %p1832_p2 = pnand %p1323_p3, %p55_p5  ;;  %s1836_s11 = int_to_ptr.vmem [resolvable:$true] %s288_s11 }
  0x4c   : > { %s278_s15 = scalar_lea.sflag [#allocation4], %s277_s19  ;;  %s1472_s17 = scalar_lea.hbm %s1828_s28, 128 }
  0x4d   : > { %p1473_p11 = scmp.ne.s32.totalorder %s1828_s28, %s1472_s17  ;;  %p1474_p12 = pneg %p1832_p2 }
  0x4e   : > { %s1477_s10 = scalar_lea.hbm %s2065_s0, 256  ;;  %p1478_p4 = scmp.lt.u32.totalorder %s1828_s28, %s2065_s0 }
  0x4f   : > { %p1475_p0 = pnand %p1474_p12, %p1473_p11  ;;  %p1479_p13 = scmp.lt.u32.totalorder %s1477_s10, %s1472_s17 }
  0x50   : > { %p1481_p10 = scmp.lt.u32.totalorder %s1472_s17, %s1828_s28 }
  0x51   : > { %p1476_p1 = pneg %p1475_p0  ;;  %p1480_p6 = por %p1479_p13, %p1478_p4 }
  0x53   : > { %p1482_p3 = por %p1481_p10, %p1480_p6 }
  0x55   : > { %p1483_p5 = pnand %p1482_p3, %p1476_p1 }
  0x57   : > { %1486 = shalt.err (!%p1483_p5)
}
  0x58   : > { %s1487_s19 = scalar_lea.vmem %s1836_s11, 128  ;;  %s1626_s30 = smov [#allocation3]  }
  0x59   : > { %p1488_p9 = scmp.ne.s32.totalorder %s1836_s11, %s1487_s19  ;;  %s1492_s18 = sshll.u32 %s1626_s30, 4  ;;  %s1493_s18 = int_to_ptr.vmem [resolvable:$false] %s1492_s18 }
  0x5a   : > { %s1494_s14 = scalar_lea.vmem %s1493_s18, 256  ;;  %p1495_p7 = scmp.lt.s32.totalorder %s1836_s11, %s1493_s18 }
  0x5b   : > { %p1490_p11 = pnand %p1488_p9, %p1474_p12  ;;  %p1496_p4 = scmp.lt.s32.totalorder %s1494_s14, %s1487_s19 }
  0x5d   : > { %p1491_p0 = pneg %p1490_p11  ;;  %p1497_p13 = por %p1496_p4, %p1495_p7 }
  0x5f   : > { %p1498_p6 = pnand %p1497_p13, %p1491_p0 }
  0x61   : > { %1501 = shalt.err (!%p1498_p6)
}
  0x62   : > { %1313 = dma.hbm_to_vmem [thread:$0]  (!%p1832_p2), %s1828_s28, 128, %s1836_s11, %s278_s15  }
  0x63   : > { %297 = sbr.rel (%p1735_p8) target bundleno = 1456 (0x5b0), region = 40  ;;  %s1866_s17 = sand.u32 (!%p1735_p8), 1, %s1604_s22  }
  0x64   : > { %s1171_s10 = sshll.u32 (!%p1735_p8), %s1866_s17, 3  ;;  %s300_s20 = scalar_lea.sflag (!%p1735_p8), [#allocation4], %s1866_s17 }
  0x65   : > { %s303_s27 = scalar_lea.vmem (!%p1735_p8), [#allocation3], %s1171_s10  ;;  %p2086_p7 = scmp.ne.s32.totalorder (!%p1735_p8), %s2079_s7, 0 }
  0x6a   : > { %1583 = dma.done.wait (%p2086_p7), %s300_s20, 128  }
  0x6b   : > { %1585 = vsyncadd (%p2086_p7), %s300_s20, 4294967168  ;;  %p2087_p2 = scmp.ne.s32.totalorder %s2077_s29, 0 }
  0x6d   : > { %1587 = dma.done.wait (%p2087_p2), [#allocation7], 512  }
  0x6e   : > { %1589 = vsyncadd (%p2087_p2), [#allocation7], 4294966784  ;;  %vm357_vm0 = vcmask 261120   ;;  %v1627_v0 = vmov 0.0   ;;  %vm1628_vm1 = vmmov 0   ;;  %v1396_v1 = vld [vmem:[#allocation6] sm:$0xff]   ;;  %v428_v23 = vlaneseq }
  0x6f   : > { %1225 = vmatprep.subr.bf16.mxu0 %v1627_v0  ;;  %1229 = vmatprep.mubr.msk.bf16.mxu0 %vm1628_vm1, %v1627_v0  ;;  %358 = vst.msk [vmem:[#allocation2] sm:$0xff] %vm357_vm0, %v1627_v0  ;;  %v1397_v2 = vld [vmem:[#allocation6 + $0x8] sm:$0xff]   ;;  %v359_v3 = vld [vmem:[%s303_s27] sm:$0xff]  ;;  %s1629_s9 = smov 120   ;;  %s1630_s28 = smov 96   ;;  %vm438_vm2 = vcmask 64512  }
  0x70   : > { %1233 = vmatprep.subr.bf16.mxu1 %v1627_v0  ;;  %1235 = vmatprep.mubr.msk.bf16.mxu1 %vm1628_vm1, %v1627_v0  ;;  %v360_v4 = vpack.c.bf16 %v359_v3, %v359_v3  ;;  %v1176_v5 = vld [vmem:[%s2067_s2] ss:$0 sm:$0xff]  ;;  %s1631_s11 = smov 80   ;;  %s1632_s8 = smov 88   ;;  %v429_v24 = vshrl.u32 %v428_v23, 7  ;;  %v431_v25 = vand.u32 127, %v428_v23 }
  0x71   : > { %1226 = vmatpush3.bf16.msra.mxu0 %v1396_v1  ;;  %s1633_s15 = smov 72   ;;  %s1634_s19 = smov 112   ;;  %vm502_vm4 = vcmask 1043456   ;;  %vm896_vm5 = vcmask 130048   ;;  %vm898_vm6 = vcmask 195584  }
  0x72   : > { %1227 = vmatprep.subr.bf16.mxu0 %v1627_v0  ;;  %s1635_s30 = smov 104   ;;  %vm432_vm3 = vcmp.gt.s32.totalorder %v431_v25, %v429_v24  ;;  %s1175_s18 = sshll.u32 %s1866_s17, 5 }
  0x73   : > { %v433_v26 = vsel %vm432_vm3, -1e+09, %v1627_v0  ;;  %s1928_s14 = scalar_lea.vmem [#allocation10], %s1175_s18  ;;  %s1636_s20 = smov 56  }
  0x74   : > { %s1637_s27 = smov 64   ;;  %s1638_s29 = smov 40  }
  0x75   : > { %1228 = vmatpush3.bf16.msra.mxu0 %v1397_v2  ;;  %s1639_s7 = smov 48   ;;  %p2088_p12 = scmp.ne.s32.totalorder %s2084_s12, 0 }
  0x76   : > { %1239 = vmatprep.subr.bf16.mxu0 %v1627_v0 }
  0x78   : > { %1230 = vmatmul.mubr.msk.bf16.vlgmr.msra.gmra.mrb[0].mxu0 %vm357_vm0, %v360_v4 }
  0x79   : > { %1241 = vmatprep.mubr.msk.bf16.mxu0 %vm1628_vm1, %v1627_v0 }
 0x14b   : > { %v422_v6 = vpop.f32.mrb[0].mxu0 }
 0x14c   : > { %v423_v7 = vadd.f32 %v1176_v5, %v422_v6  ;;  %v1231_v8 = vpop.f32.mrb[1].mxu0 }
 0x14d   : > { %v425_v9 = vpop.f32.mrb[2].mxu0 }
 0x14e   : > { %v1896_v10 = vpack.c.bf16 %v423_v7, %v423_v7  ;;  %v1232_v11 = vpop.f32.mrb[3].mxu0 }
 0x150   : > { %547 = vrot.lane.b32.xlu1 %v1896_v10, %s1629_s9  ;;  %436 = vrot.lane.b32.xlu0 %v1896_v10, %s1630_s28  ;;  %s1640_s9 = smov 8   ;;  %s1641_s28 = smov 16  }
 0x154   : > { %661 = vrot.lane.b32.xlu1 %v1896_v10, %s1631_s11  ;;  %549 = vrot.lane.b32.xlu0 %v1896_v10, %s1632_s8  ;;  %s1642_s11 = smov 24   ;;  %s1010_s8 = sshll.u32 %s1928_s14, 4  ;;  %s1972_s8 = int_to_ptr.vmem [resolvable:$true] %s1010_s8 }
 0x158   : > { %773 = vrot.lane.b32.xlu1 %v1896_v10, %s1633_s15  ;;  %659 = vrot.lane.b32.xlu0 %v1896_v10, %s1634_s19  ;;  %s1202_s15 = sshll.u32 %s1612_s24, 9 }
 0x159   : > { %s1978_s18 = scalar_lea.hbm %s2071_s6, %s1202_s15 }
 0x15c   : > { %771 = vrot.lane.b32.xlu0 %v1896_v10, %s1635_s30 }
 0x1c2   : > { %v437_v12 = vpop.permute.xlu0 %436  ;;  %v548_v15 = vpop.permute.xlu1 %547 }
 0x1c3   : > { %v443_v13 = vsel %vm438_vm2, %v437_v12, 0 }
 0x1c4   : > { %1234 = vmatpush3.bf16.xpose.msra.mxu1 %v443_v13 }
 0x1c5   : > { %1245 = vmatprep.subr.bf16.mxu1 %v1627_v0 }
 0x1c6   : > { %v550_v14 = vpop.permute.xlu0 %549  ;;  %v662_v17 = vpop.permute.xlu1 %661 }
 0x1c7   : > { %v555_v16 = vsel %vm438_vm2, %v550_v14, 0  ;;  %v667_v18 = vsel %vm438_vm2, %v662_v17, 0 }
 0x1ca   : > { %v774_v19 = vpop.permute.xlu1 %773  ;;  %v660_v20 = vpop.permute.xlu0 %659 }
 0x1cb   : > { %1236 = vmatmul.mubr.msk.bf16.vlgmr.msra.gmra.mrb[0].mxu1 %vm438_vm2, %v1896_v10  ;;  %v779_v21 = vsel %vm438_vm2, %v774_v19, 0 }
 0x1cc   : > { %1246 = vmatpush3.bf16.xpose.msra.mxu1 %v555_v16  ;;  %1247 = vmatprep.mubr.msk.bf16.mxu1 %vm1628_vm1, %v1627_v0 }
 0x1cd   : > { %1257 = vmatprep.subr.bf16.mxu1 %v1627_v0 }
 0x1ce   : > { %v772_v22 = vpop.permute.xlu0 %771 }
 0x1d3   : > { %1248 = vmatmul.mubr.msk.bf16.vlgmr.msra.gmra.mrb[4].mxu1 %vm438_vm2, %v548_v15 }
 0x1d4   : > { %1258 = vmatpush3.bf16.xpose.msra.mxu1 %v667_v18  ;;  %1259 = vmatprep.mubr.msk.bf16.mxu1 %vm1628_vm1, %v1627_v0 }
 0x1d5   : > { %1269 = vmatprep.subr.bf16.mxu1 %v1627_v0 }
 0x1db   : > { %1260 = vmatmul.mubr.msk.bf16.vlgmr.msra.gmra.mrb[8].mxu1 %vm438_vm2, %v660_v20 }
 0x1dc   : > { %1270 = vmatpush3.bf16.xpose.msra.mxu1 %v779_v21  ;;  %1271 = vmatprep.mubr.msk.bf16.mxu1 %vm1628_vm1, %v1627_v0 }
 0x1dd   : > { %1281 = vmatprep.subr.bf16.mxu1 %v1627_v0 }
 0x1e3   : > { %1272 = vmatmul.mubr.msk.bf16.vlgmr.msra.gmra.mrb[12].mxu1 %vm438_vm2, %v772_v22 }
 0x1e4   : > { %1285 = vmatprep.mubr.msk.bf16.mxu1 %vm1628_vm1, %v1627_v0 }
 0x29e   : > { %v479_v27 = vpop.f32.mrb[0].mxu1 }
 0x29f   : > { %v480_v28 = vadd.f32 %v479_v27, %v433_v26  ;;  %v1237_v29 = vpop.f32.mrb[1].mxu1 }
 0x2a0   : > { %v482_v30 = vpop.f32.mrb[2].mxu1 }
 0x2a1   : > { %485 = vst.msk [vmem:[%s1928_s14] sm:$0xff] %vm438_vm2, %v480_v28  ;;  %v1238_v31 = vpop.f32.mrb[3].mxu1  ;;  %v486_v32 = vsel %vm438_vm2, %v480_v28, -inf }
 0x2a2   : > { %487 = vmax.xlane.f32.xlu1 %v486_v32  ;;  %v1398_v32 = vld [vmem:[#allocation8] sm:$0xff]  }
 0x2a3   : > { %1282 = vmatpush3.bf16.msra.mxu1 %v1398_v32 }
 0x2a4   : > { %1283 = vmatprep.subr.bf16.mxu1 %v1627_v0 }
 0x2a6   : > { %v591_v33 = vpop.f32.mrb[4].mxu1 }
 0x2a7   : > { %v592_v34 = vadd.f32 %v591_v33, %v433_v26  ;;  %v1249_v35 = vpop.f32.mrb[5].mxu1 }
 0x2a8   : > { %v594_v36 = vpop.f32.mrb[6].mxu1 }
 0x2a9   : > { %1183 = vst.msk [vmem:[%s1928_s14 + $0x8] sm:$0xff] %vm438_vm2, %v592_v34  ;;  %v1250_v37 = vpop.f32.mrb[7].mxu1  ;;  %v599_v38 = vsel %vm438_vm2, %v592_v34, -inf }
 0x2aa   : > { %600 = vmax.xlane.f32.xlu0 %v599_v38 }
 0x2ae   : > { %v703_v39 = vpop.f32.mrb[8].mxu1 }
 0x2af   : > { %v704_v40 = vadd.f32 %v703_v39, %v433_v26  ;;  %v1261_v41 = vpop.f32.mrb[9].mxu1 }
 0x2b0   : > { %v706_v42 = vpop.f32.mrb[10].mxu1 }
 0x2b1   : > { %1186 = vst.msk [vmem:[%s1928_s14 + $0x10] sm:$0xff] %vm438_vm2, %v704_v40  ;;  %v1262_v43 = vpop.f32.mrb[11].mxu1  ;;  %v711_v44 = vsel %vm438_vm2, %v704_v40, -inf }
 0x2b2   : > { %712 = vmax.xlane.f32.xlu0 %v711_v44 }
 0x2b3   : > { %610 = vrot.lane.b32.xlu1 %v1896_v10, %s1636_s20  ;;  %s982_s20 = scalar_lea.sflag [#allocation11], %s1866_s17 }
 0x2b6   : > { %v815_v45 = vpop.f32.mrb[12].mxu1 }
 0x2b7   : > { %v816_v46 = vadd.f32 %v815_v45, %v433_v26  ;;  %v1273_v47 = vpop.f32.mrb[13].mxu1 }
 0x2b8   : > { %v818_v48 = vpop.f32.mrb[14].mxu1 }
 0x2b9   : > { %1189 = vst.msk [vmem:[%s1928_s14 + $0x18] sm:$0xff] %vm438_vm2, %v816_v46  ;;  %v1274_v49 = vpop.f32.mrb[15].mxu1  ;;  %v823_v50 = vsel %vm438_vm2, %v816_v46, -inf }
 0x2c8   : > { %497 = vrot.lane.b32.xlu0 %v1896_v10, %s1637_s27  ;;  %s1502_s27 = scalar_lea.vmem %s1972_s8, 512 }
 0x2c9   : > { %p1503_p8 = scmp.ne.s32.totalorder %s1972_s8, %s1502_s27 }
 0x2cb   : > { %p1504_p1 = pnand %p1503_p8, %p2088_p12 }
 0x2cc   : > { %834 = vrot.lane.b32.xlu0 %v1896_v10, %s1638_s29  ;;  %s1643_s29 = smov [#allocation10]  }
 0x2cd   : > { %p1505_p10 = pneg %p1504_p1 }
 0x2d7   : > { %824 = vmax.xlane.f32.xlu1 %v823_v50 }
 0x2e8   : > { %722 = vrot.lane.b32.xlu1 %v1896_v10, %s1639_s7  ;;  %s1506_s7 = sshll.u32 %s1643_s29, 4  ;;  %s1507_s7 = int_to_ptr.vmem [resolvable:$false] %s1506_s7 }
 0x2e9   : > { %s1508_s14 = scalar_lea.vmem %s1507_s7, 1024  ;;  %p1509_p3 = scmp.lt.s32.totalorder %s1972_s8, %s1507_s7 }
 0x2ea   : > { %p1510_p5 = scmp.lt.s32.totalorder %s1508_s14, %s1502_s27 }
 0x2ec   : > { %p1511_p9 = por %p1510_p5, %p1509_p3 }
 0x2ee   : > { %p1512_p11 = pnand %p1511_p9, %p1505_p10 }
 0x32f   : > { %v488_v51 = vpop.xlane.xlu1 %487 }
 0x330   : > { %v489_v52 = vsub.f32 %v480_v28, %v488_v51 }
 0x332   : > { %v490_v53 = vmul.f32 1.442695, %v489_v52 }
 0x333   : > { %v611_v63 = vpop.permute.xlu1 %610 }
 0x334   : > { %1400 = vpow2.f32 %v490_v53  ;;  %v616_v4 = vsel %vm502_vm4, %v611_v63, 0 }
 0x337   : > { %v601_v54 = vpop.xlane.xlu0 %600 }
 0x338   : > { %v602_v55 = vsub.f32 %v592_v34, %v601_v54  ;;  %v1399_v34 = vld [vmem:[#allocation8 + $0x8] sm:$0xff]  }
 0x339   : > { %1284 = vmatpush3.bf16.msra.mxu1 %v1399_v34 }
 0x33a   : > { %v603_v56 = vmul.f32 1.442695, %v602_v55 }
 0x33c   : > { %1402 = vpow2.f32 %v603_v56 }
 0x33e   : > { %v1401_v60 = vpop.eup %1400 }
 0x33f   : > { %v713_v57 = vpop.xlane.xlu0 %712  ;;  %v496_v2 = vpack.c.bf16 %v1401_v60, %v1401_v60  ;;  %v492_v5 = vsel %vm438_vm2, %v1401_v60, 0.0 }
 0x340   : > { %v714_v58 = vsub.f32 %v704_v40, %v713_v57 }
 0x342   : > { %v715_v59 = vmul.f32 1.442695, %v714_v58 }
 0x343   : > { %v498_v61 = vpop.permute.xlu0 %497 }
 0x344   : > { %1404 = vpow2.f32 %v715_v59  ;;  %v504_v62 = vsel %vm502_vm4, %v498_v61, 0 }
 0x345   : > { %1240 = vmatpush3.bf16.msra.mxu0 %v504_v62 }
 0x346   : > { %v1403_v1 = vpop.eup %1402  ;;  %1251 = vmatprep.subr.bf16.mxu0 %v1627_v0 }
 0x347   : > { %v605_v3 = vsel %vm438_vm2, %v1403_v1, 0.0  ;;  %v609_v7 = vpack.c.bf16 %v1403_v1, %v1403_v1  ;;  %v835_v14 = vpop.permute.xlu0 %834 }
 0x348   : > { %606 = vadd.xlane.f32.xlu1 %v605_v3  ;;  %1242 = vmatmul.mubr.msk.bf16.vlgmr.msra.gmra.mrb[4].mxu0 %vm438_vm2, %v496_v2  ;;  %v840_v16 = vsel %vm502_vm4, %v835_v14, 0 }
 0x349   : > { %1252 = vmatpush3.bf16.msra.mxu0 %v616_v4  ;;  %1253 = vmatprep.mubr.msk.bf16.mxu0 %vm1628_vm1, %v1627_v0 }
 0x34a   : > { %1263 = vmatprep.subr.bf16.mxu0 %v1627_v0 }
 0x34c   : > { %493 = vadd.xlane.f32.xlu1 %v492_v5 }
 0x34e   : > { %v1405_v6 = vpop.eup %1404 }
 0x34f   : > { %v717_v8 = vsel %vm438_vm2, %v1405_v6, 0.0  ;;  %v721_v15 = vpack.c.bf16 %v1405_v6, %v1405_v6 }
 0x350   : > { %718 = vadd.xlane.f32.xlu0 %v717_v8  ;;  %1254 = vmatmul.mubr.msk.bf16.vlgmr.msra.gmra.mrb[8].mxu0 %vm438_vm2, %v609_v7 }
 0x351   : > { %1265 = vmatprep.mubr.msk.bf16.mxu0 %vm1628_vm1, %v1627_v0 }
 0x364   : > { %v825_v9 = vpop.xlane.xlu1 %824 }
 0x365   : > { %v826_v10 = vsub.f32 %v816_v46, %v825_v9 }
 0x367   : > { %v827_v11 = vmul.f32 1.442695, %v826_v10 }
 0x368   : > { %v723_v12 = vpop.permute.xlu1 %722 }
 0x369   : > { %1406 = vpow2.f32 %v827_v11  ;;  %v728_v13 = vsel %vm502_vm4, %v723_v12, 0 }
 0x36a   : > { %1264 = vmatpush3.bf16.msra.mxu0 %v728_v13 }
 0x36b   : > { %1275 = vmatprep.subr.bf16.mxu0 %v1627_v0 }
 0x36d   : > { %1266 = vmatmul.mubr.msk.bf16.vlgmr.msra.gmra.mrb[12].mxu0 %vm438_vm2, %v721_v15 }
 0x36e   : > { %1276 = vmatpush3.bf16.msra.mxu0 %v840_v16  ;;  %1277 = vmatprep.mubr.msk.bf16.mxu0 %vm1628_vm1, %v1627_v0 }
 0x373   : > { %v1407_v17 = vpop.eup %1406 }
 0x374   : > { %v829_v18 = vsel %vm438_vm2, %v1407_v17, 0.0  ;;  %v833_v19 = vpack.c.bf16 %v1407_v17, %v1407_v17 }
 0x375   : > { %830 = vadd.xlane.f32.xlu0 %v829_v18 }
 0x376   : > { %1278 = vmatmul.mubr.msk.bf16.vlgmr.msra.gmra.mrb[16].mxu0 %vm438_vm2, %v833_v19 }
 0x3d5   : > { %v607_v20 = vpop.xlane.xlu1 %606 }
 0x3d6   : > { %1408 = vrcp.f32 %v607_v20 }
 0x3d9   : > { %v494_v46 = vpop.xlane.xlu1 %493 }
 0x3dd   : > { %v719_v31 = vpop.xlane.xlu0 %718 }
 0x3de   : > { %1410 = vrcp.f32 %v719_v31 }
 0x3e0   : > { %v1409_v25 = vpop.eup %1408 }
 0x3e8   : > { %v1411_v35 = vpop.eup %1410 }
 0x402   : > { %v831_v33 = vpop.xlane.xlu0 %830 }
 0x403   : > { %1412 = vrcp.f32 %v831_v33 }
 0x404   : > { %1414 = vrcp.f32 %v494_v46 }
 0x40d   : > { %v1413_v41 = vpop.eup %1412 }
 0x40e   : > { %v1415_v47 = vpop.eup %1414 }
 0x41b   : > { %v540_v21 = vpop.f32.mrb[4].mxu0 }
 0x41c   : > { %v1243_v22 = vpop.f32.mrb[5].mxu0  ;;  %v546_v50 = vmul.f32 %v1415_v47, %v540_v21 }
 0x41d   : > { %v543_v23 = vpop.f32.mrb[6].mxu0 }
 0x41e   : > { %v1244_v24 = vpop.f32.mrb[7].mxu0 }
 0x423   : > { %v652_v26 = vpop.f32.mrb[8].mxu0 }
 0x424   : > { %v658_v27 = vmul.f32 %v1409_v25, %v652_v26  ;;  %v1255_v28 = vpop.f32.mrb[9].mxu0 }
 0x425   : > { %v655_v29 = vpop.f32.mrb[10].mxu0 }
 0x426   : > { %884 = vrot.lane.b32.xlu0 %v658_v27, %s1640_s9  ;;  %v1256_v30 = vpop.f32.mrb[11].mxu0 }
 0x440   : > { %v764_v36 = vpop.f32.mrb[12].mxu0 }
 0x441   : > { %v770_v37 = vmul.f32 %v1411_v35, %v764_v36  ;;  %v1267_v38 = vpop.f32.mrb[13].mxu0 }
 0x442   : > { %v767_v39 = vpop.f32.mrb[14].mxu0 }
 0x443   : > { %888 = vrot.lane.b32.xlu1 %v770_v37, %s1641_s28  ;;  %v1268_v40 = vpop.f32.mrb[15].mxu0 }
 0x449   : > { %v876_v42 = vpop.f32.mrb[16].mxu0 }
 0x44a   : > { %v882_v43 = vmul.f32 %v1413_v41, %v876_v42  ;;  %v1279_v44 = vpop.f32.mrb[17].mxu0 }
 0x44b   : > { %v879_v45 = vpop.f32.mrb[18].mxu0 }
 0x44c   : > { %892 = vrot.lane.b32.xlu1 %v882_v43, %s1642_s11  ;;  %v1280_v0 = vpop.f32.mrb[19].mxu0 }
 0x498   : > { %v885_v48 = vpop.permute.xlu0 %884 }
 0x499   : > { %v895_v51 = vsel %vm438_vm2, %v546_v50, %v885_v48 }
 0x4b5   : > { %v889_v49 = vpop.permute.xlu1 %888 }
 0x4b6   : > { %v897_v52 = vsel %vm896_vm5, %v895_v51, %v889_v49 }
 0x4be   : > { %v893_v53 = vpop.permute.xlu1 %892 }
 0x4bf   : > { %v899_v54 = vsel %vm898_vm6, %v897_v52, %v893_v53 }
 0x4c0   : > { %v900_v55 = vpack.c.bf16 %v899_v54, %v899_v54 }
 0x4c2   : > { %1286 = vmatmul.mubr.msk.bf16.vlgmr.msra.gmra.mrb[16].mxu1 %vm357_vm0, %v900_v55 }
 0x4c3   : > { %1515 = shalt.err (!%p1512_p11)
}
 0x4c4   : > { %s1516_s28 = scalar_lea.hbm %s1978_s18, 512  ;;  %s1520_s19 = scalar_lea.hbm %s2071_s6, 1024 }
 0x4c5   : > { %p1517_p0 = scmp.ne.s32.totalorder %s1978_s18, %s1516_s28  ;;  %p1521_p6 = scmp.lt.u32.totalorder %s1978_s18, %s2071_s6 }
 0x4c6   : > { %p1522_p7 = scmp.lt.u32.totalorder %s1520_s19, %s1516_s28  ;;  %p1524_p8 = scmp.lt.u32.totalorder %s1516_s28, %s1978_s18 }
 0x4c7   : > { %p1518_p4 = pnand %p1517_p0, %p2088_p12 }
 0x4c8   : > { %p1523_p2 = por %p1522_p7, %p1521_p6 }
 0x4c9   : > { %p1519_p13 = pneg %p1518_p4 }
 0x4ca   : > { %p1525_p1 = por %p1524_p8, %p1523_p2 }
 0x4cc   : > { %p1526_p10 = pnand %p1525_p1, %p1519_p13 }
 0x4ce   : > { %1529 = shalt.err (!%p1526_p10)
}
 0x4cf   : > { %s1644_s27 = smov 128   ;;  %v901_v56 = vld [vmem:[#allocation2] sm:$0xff]  ;;  %s1197_s28 = sshll.u32 %s1612_s24, 7 }
 0x4d0   : > { %1300 = dma.vmem_to_hbm [thread:$0]  (%p2088_p12), %s1972_s8, 512, %s1978_s18, %s982_s20, %s1644_s27, %s1644_s27, %s1640_s9  }
 0x4d1   : > { %v1194_v62 = vld [vmem:[%s2069_s4] ss:$0 sm:$0xff]  ;;  %s340_s11 = scalar_lea.vmem [#allocation9], %s1171_s10  ;;  %s2015_s18 = scalar_lea.hbm %s2070_s5, %s1197_s28 }
 0x4d2   : > { %s995_s15 = sshll.u32 %s340_s11, 4  ;;  %s977_s20 = scalar_lea.sflag [#allocation5], %s1866_s17  ;;  %s2017_s15 = int_to_ptr.vmem [resolvable:$true] %s995_s15 }
 0x4d3   : > { %s1530_s19 = scalar_lea.vmem %s2017_s15, 128  ;;  %s1645_s24 = smov [#allocation9]  }
 0x4d4   : > { %p1531_p3 = scmp.ne.s32.totalorder %s2017_s15, %s1530_s19  ;;  %s1534_s10 = sshll.u32 %s1645_s24, 4  ;;  %s1535_s10 = int_to_ptr.vmem [resolvable:$false] %s1534_s10 }
 0x4d5   : > { %s1536_s30 = scalar_lea.vmem %s1535_s10, 256  ;;  %p1537_p11 = scmp.lt.s32.totalorder %s2017_s15, %s1535_s10 }
 0x4d6   : > { %p1532_p5 = pnand %p1531_p3, %p2088_p12  ;;  %p1538_p0 = scmp.lt.s32.totalorder %s1536_s30, %s1530_s19 }
 0x4d8   : > { %p1533_p9 = pneg %p1532_p5  ;;  %p1539_p4 = por %p1538_p0, %p1537_p11 }
 0x4da   : > { %p1540_p13 = pnand %p1539_p4, %p1533_p9 }
 0x595   : > { %v955_v57 = vpop.f32.mrb[16].mxu1 }
 0x596   : > { %v961_v58 = vadd.f32 %v955_v57, %v901_v56  ;;  %v1287_v59 = vpop.f32.mrb[17].mxu1 }
 0x597   : > { %v958_v60 = vpop.f32.mrb[18].mxu1 }
 0x598   : > { %962 = vst.msk [vmem:[#allocation2] sm:$0xff] %vm357_vm0, %v961_v58  ;;  %v1288_v61 = vpop.f32.mrb[19].mxu1 }
 0x59f   : > { %v966_v63 = vld [vmem:[#allocation2] sm:$0xff] }
 0x5a0   : > { %v974_v1 = vadd.f32 %v1194_v62, %v966_v63 }
 0x5a2   : > { %975 = vst.msk [vmem:[%s340_s11] sm:$0xff] %vm357_vm0, %v974_v1 }
 0x5a3   : > { %1543 = shalt.err (!%p1540_p13)
}
 0x5a4   : > { %s1544_s17 = scalar_lea.hbm %s2015_s18, 128  ;;  %s1548_s7 = scalar_lea.hbm %s2070_s5, 256 }
 0x5a5   : > { %p1545_p6 = scmp.ne.s32.totalorder %s2015_s18, %s1544_s17  ;;  %p1549_p8 = scmp.lt.u32.totalorder %s2015_s18, %s2070_s5 }
 0x5a6   : > { %p1550_p1 = scmp.lt.u32.totalorder %s1548_s7, %s1544_s17  ;;  %p1552_p3 = scmp.lt.u32.totalorder %s1544_s17, %s2015_s18 }
 0x5a7   : > { %p1546_p7 = pnand %p1545_p6, %p2088_p12 }
 0x5a8   : > { %p1551_p10 = por %p1550_p1, %p1549_p8 }
 0x5a9   : > { %p1547_p2 = pneg %p1546_p7 }
 0x5aa   : > { %p1553_p5 = por %p1552_p3, %p1551_p10 }
 0x5ac   : > { %p1554_p9 = pnand %p1553_p5, %p1547_p2 }
 0x5ae   : > { %1557 = shalt.err (!%p1554_p9)
}
 0x5af   : > { %1299 = dma.vmem_to_hbm [thread:$0]  (%p2088_p12), %s2017_s15, 128, %s2015_s18, %s977_s20  }
 0x5b0 PF: > { %s2089_s11 = sld [smem:[#allocation16_spill]]  ;;  %s1025_s9 = sand.u32 1, %s1600_s21  }
 0x5b1   : > { %p2091_p0 = scmp.ge.s32.totalorder %s1620_s26, 2  ;;  %s1026_s8 = scalar_lea.sflag [#allocation5], %s1025_s9 }
 0x5b6   : > { %p2090_p11 = scmp.ne.s32.totalorder %s2089_s11, 0 }
 0x5b8   : > { %p1315_p4 = pnand %p2091_p0, %p2090_p11 }
 0x5ba   : > { %1591 = dma.done.wait (!%p1315_p4), %s1026_s8, 128  }
 0x5bb   : > { %1593 = vsyncadd (!%p1315_p4), %s1026_s8, 4294967168  ;;  %s1035_s19 = scalar_lea.sflag [#allocation11], %s1025_s9 }
 0x5bc   : > { %1595 = dma.done.wait (!%p1315_p4), %s1035_s19, 512  }
 0x5bd   : > { %1597 = vsyncadd (!%p1315_p4), %s1035_s19, 4294966784  ;;  %s27_s26 = sadd.s32 1, %s1620_s26   ;;  %s2092_s21 = smov %s1604_s22 }
 0x5be   : > { %p24_p13 = scmp.ge.s32.totalorder %s27_s26, 4   ;;  %s2093_s22 = smov %s1608_s23 }
 0x5bf   : > { %s2094_s23 = smov %s1823_s13  ;;  %s2095_s24 = smov %s1616_s25 }
 0x5c0   : > { %s2096_s25 = smov %s2098_s16  ;;  %26 = sbr.rel (!%p24_p13) target bundleno = 9 (0x9), region = 126 }
 0x5c7   :  { %1040 = vsyncpa [#allocation4], 1 }
 0x5c8   :  { %1042 = vsyncpa [#allocation4 + $0x1], 1 }
 0x5c9   :  { %1043 = vsyncpa [#allocation7], 1 }
 0x5ca   :  { %1044 = vsyncpa [#allocation5], 1 }
 0x5cb   :  { %1046 = vsyncpa [#allocation5 + $0x1], 1 }
 0x5cc   :  { %1047 = vsyncpa [#allocation11], 1 }
 0x5cd   :  { %1049 = vsyncpa [#allocation11 + $0x1], 1 }

</bundles_post_ra>
